<compile_context>
chip_gen: v6e
topology: v6e:2x2x1
jax: 0.10.0
libtpu: 0.0.40
codegen_flags: <defaults>
</compile_context>

<pallas_src>
import jax
import jax.numpy as jnp
from jax.experimental import pallas as pl
from jax.experimental.pallas import tpu as pltpu


def _round_up(x, m):
    return ((x + m - 1) // m) * m


def mlp_kernel(x_ref, w1_ref, b1_ref, w2_ref, b2_ref, out_ref):
    # hidden = relu(x @ W1 + b1): bf16 operands on the MXU, f32 accumulation.
    h = jnp.dot(x_ref[...], w1_ref[...], preferred_element_type=jnp.float32)
    h = jnp.maximum(h + b1_ref[...], 0.0)                 # bias + ReLU in f32
    # out = hidden @ W2 + b2 (hidden re-cast to bf16 for the second MXU pass).
    o = jnp.dot(h.astype(jnp.bfloat16), w2_ref[...],
                preferred_element_type=jnp.float32)
    out_ref[...] = (o + b2_ref[...]).astype(out_ref.dtype)


def net_forward(x, w1, b1, w2, b2, *, block_batch=512):
    """Fused forward of Net: relu(x @ W1 + b1) @ W2 + b2.

    w1: (n_features, n_hidden), w2: (n_hidden, n_output)  [transposed vs torch]
    b1: (n_hidden,) or (1, n_hidden), b2: (n_output,) or (1, n_output)
    """
    batch, n_features = x.shape
    n_hidden, n_output = w2.shape
    assert w1.shape == (n_features, n_hidden)

    # Lane-dense output: pad the output dim up to a multiple of 128.
    out_pad = _round_up(n_output, 128)

    # Batch-only tiling. TB multiple of 16 (bf16 sublane packing); for small
    # batches this degenerates to a single grid point with everything in VMEM.
    tb = min(block_batch, _round_up(batch, 16))
    batch_pad = _round_up(batch, tb)

    # bf16 operands for the MXU; biases stay f32. Zero-pad batch / output dims.
    x_p = jnp.zeros((batch_pad, n_features), jnp.bfloat16).at[:batch].set(
        x.astype(jnp.bfloat16))
    w1_b = w1.astype(jnp.bfloat16)
    w2_b = jnp.zeros((n_hidden, out_pad), jnp.bfloat16).at[:, :n_output].set(
        w2.astype(jnp.bfloat16))
    b1_f = b1.reshape(1, n_hidden).astype(jnp.float32)
    b2_f = jnp.zeros((1, out_pad), jnp.float32).at[:, :n_output].set(
        b2.reshape(1, n_output).astype(jnp.float32))

    grid = (batch_pad // tb,)
    out_padded = pl.pallas_call(
        mlp_kernel,
        out_shape=jax.ShapeDtypeStruct((batch_pad, out_pad), jnp.float32),
        grid=grid,
        in_specs=[
            # x streams through (TB, F) tiles, one per grid step.
            pl.BlockSpec((tb, n_features), lambda i: (i, 0)),
            # Weights / biases: constant index_map -> resident in VMEM.
            pl.BlockSpec((n_features, n_hidden), lambda i: (0, 0)),
            pl.BlockSpec((1, n_hidden), lambda i: (0, 0)),
            pl.BlockSpec((n_hidden, out_pad), lambda i: (0, 0)),
            pl.BlockSpec((1, out_pad), lambda i: (0, 0)),
        ],
        out_specs=pl.BlockSpec((tb, out_pad), lambda i: (i, 0)),
        compiler_params=pltpu.CompilerParams(
            # Independent batch tiles: lets Mosaic shard across v7x's 2 TCs.
            dimension_semantics=("parallel",),
        ),
    )(x_p, w1_b, b1_f, w2_b, b2_f)

    # Strip batch padding and the lane padding of the output dim.
    return out_padded[:batch, :n_output].astype(x.dtype)


def init_params(key, n_features, n_hidden, n_output):
    """Deterministic init mimicking torch.nn.Linear (uniform +-1/sqrt(fan_in))."""
    k1, k2, k3, k4 = jax.random.split(key, 4)
    bound1 = 1.0 / jnp.sqrt(n_features)
    bound2 = 1.0 / jnp.sqrt(n_hidden)
    w1 = jax.random.uniform(k1, (n_features, n_hidden), jnp.float32, -bound1, bound1)
    b1 = jax.random.uniform(k2, (1, n_hidden), jnp.float32, -bound1, bound1)
    w2 = jax.random.uniform(k3, (n_hidden, n_output), jnp.float32, -bound2, bound2)
    b2 = jax.random.uniform(k4, (1, n_output), jnp.float32, -bound2, bound2)
    return w1, b1, w2, b2


if __name__ == "__main__":
    # Net(n_features=4, n_hidden=32, n_output=3), batch=8
    n_features, n_hidden, n_output = 4, 32, 3
    batch = 8

    key = jax.random.PRNGKey(0)
    kx, kp = jax.random.split(key)
    x = jax.random.normal(kx, (batch, n_features), jnp.float32)
    w1, b1, w2, b2 = init_params(kp, n_features, n_hidden, n_output)

    out = net_forward(x, w1, b1, w2, b2)
    out = jax.block_until_ready(out)

    # Pure-JAX f32 reference; kernel uses bf16 operands, so use a loose (but
    # still meaningful) tolerance.
    ref = jnp.maximum(x @ w1 + b1, 0.0) @ w2 + b2
    assert out.shape == (batch, n_output)
    assert jnp.allclose(out, ref, atol=5e-2, rtol=5e-2), float(
        jnp.max(jnp.abs(out - ref)))

    print("KERNEL_OK")
</pallas_src>

<mosaic_0001>
module attributes {stable_mosaic.version = 11 : i64} {
  func.func @mlp_kernel(%arg0: i32, %arg1: memref<16x4xbf16, #tpu.memory_space<vmem>>, %arg2: memref<4x32xbf16, #tpu.memory_space<vmem>>, %arg3: memref<1x32xf32, #tpu.memory_space<vmem>>, %arg4: memref<32x128xbf16, #tpu.memory_space<vmem>>, %arg5: memref<1x128xf32, #tpu.memory_space<vmem>>, %arg6: memref<16x128xf32, #tpu.memory_space<vmem>>) attributes {dimension_semantics = [#tpu.dimension_semantics<parallel>], iteration_bounds = array<i64: 1>, scalar_prefetch = 0 : i64, scratch_operands = 0 : i64, tpu.core_type = #tpu.core_type<tc>, window_params = [{transform_indices = @transform_0, window_bounds = array<i64: 16, 4>}, {pipeline_mode = #tpu.pipeline_mode<synchronous>, transform_indices = @transform_1, window_bounds = array<i64: 4, 32>}, {pipeline_mode = #tpu.pipeline_mode<synchronous>, transform_indices = @transform_2, window_bounds = array<i64: 1, 32>}, {pipeline_mode = #tpu.pipeline_mode<synchronous>, transform_indices = @transform_3, window_bounds = array<i64: 32, 128>}, {pipeline_mode = #tpu.pipeline_mode<synchronous>, transform_indices = @transform_4, window_bounds = array<i64: 1, 128>}, {transform_indices = @transform_5, window_bounds = array<i64: 16, 128>}]} {
    %c0 = arith.constant 0 : index
    %c0_0 = arith.constant 0 : index
    %0 = vector.load %arg1[%c0, %c0_0] : memref<16x4xbf16, #tpu.memory_space<vmem>>, vector<16x4xbf16>
    %c0_1 = arith.constant 0 : index
    %c0_2 = arith.constant 0 : index
    %1 = vector.load %arg2[%c0_1, %c0_2] : memref<4x32xbf16, #tpu.memory_space<vmem>>, vector<4x32xbf16>
    %cst = arith.constant dense<0.000000e+00> : vector<16x32xf32>
    %2 = tpu.matmul %0, %1, %cst {dimension_numbers = #tpu.dot_dimension_numbers<[1], [0], [0], [1], [0, 0, 1, 1], [], []>} : vector<16x4xbf16>, vector<4x32xbf16>, vector<16x32xf32> -> vector<16x32xf32>
    %c0_3 = arith.constant 0 : index
    %c0_4 = arith.constant 0 : index
    %3 = vector.load %arg3[%c0_3, %c0_4] : memref<1x32xf32, #tpu.memory_space<vmem>>, vector<1x32xf32>
    %4 = vector.broadcast %3 : vector<1x32xf32> to vector<16x32xf32>
    %5 = arith.addf %2, %4 : vector<16x32xf32>
    %cst_5 = arith.constant 0.000000e+00 : f32
    %6 = vector.broadcast %cst_5 : f32 to vector<16x32xf32>
    %7 = arith.maximumf %5, %6 : vector<16x32xf32>
    %8 = arith.truncf %7 : vector<16x32xf32> to vector<16x32xbf16>
    %c0_6 = arith.constant 0 : index
    %c0_7 = arith.constant 0 : index
    %9 = vector.load %arg4[%c0_6, %c0_7] : memref<32x128xbf16, #tpu.memory_space<vmem>>, vector<32x128xbf16>
    %cst_8 = arith.constant dense<0.000000e+00> : vector<16x128xf32>
    %10 = tpu.matmul %8, %9, %cst_8 {dimension_numbers = #tpu.dot_dimension_numbers<[1], [0], [0], [1], [0, 0, 1, 1], [], []>} : vector<16x32xbf16>, vector<32x128xbf16>, vector<16x128xf32> -> vector<16x128xf32>
    %c0_9 = arith.constant 0 : index
    %c0_10 = arith.constant 0 : index
    %11 = vector.load %arg5[%c0_9, %c0_10] : memref<1x128xf32, #tpu.memory_space<vmem>>, vector<1x128xf32>
    %12 = vector.broadcast %11 : vector<1x128xf32> to vector<16x128xf32>
    %13 = arith.addf %10, %12 : vector<16x128xf32>
    %c0_11 = arith.constant 0 : index
    %c0_12 = arith.constant 0 : index
    %14 = vector.load %arg6[%c0_11, %c0_12] : memref<16x128xf32, #tpu.memory_space<vmem>>, vector<16x128xf32>
    tpu.vector_store %arg6[%c0_11, %c0_12], %13 {strides = array<i32>} : memref<16x128xf32, #tpu.memory_space<vmem>>, vector<16x128xf32>,
    return
  }
  func.func @transform_0(%arg0: i32) -> (i32, i32) {
    %c0_i32 = arith.constant 0 : i32
    %c0_i32_0 = arith.constant 0 : i32
    return %arg0, %c0_i32 : i32, i32
  }
  func.func @transform_1(%arg0: i32) -> (i32, i32) {
    %c0_i32 = arith.constant 0 : i32
    %c0_i32_0 = arith.constant 0 : i32
    %c0_i32_1 = arith.constant 0 : i32
    return %c0_i32, %c0_i32_0 : i32, i32
  }
  func.func @transform_2(%arg0: i32) -> (i32, i32) {
    %c0_i32 = arith.constant 0 : i32
    %c0_i32_0 = arith.constant 0 : i32
    %c0_i32_1 = arith.constant 0 : i32
    return %c0_i32, %c0_i32_0 : i32, i32
  }
  func.func @transform_3(%arg0: i32) -> (i32, i32) {
    %c0_i32 = arith.constant 0 : i32
    %c0_i32_0 = arith.constant 0 : i32
    %c0_i32_1 = arith.constant 0 : i32
    return %c0_i32, %c0_i32_0 : i32, i32
  }
  func.func @transform_4(%arg0: i32) -> (i32, i32) {
    %c0_i32 = arith.constant 0 : i32
    %c0_i32_0 = arith.constant 0 : i32
    %c0_i32_1 = arith.constant 0 : i32
    return %c0_i32, %c0_i32_0 : i32, i32
  }
  func.func @transform_5(%arg0: i32) -> (i32, i32) {
    %c0_i32 = arith.constant 0 : i32
    %c0_i32_0 = arith.constant 0 : i32
    return %arg0, %c0_i32 : i32, i32
  }
}

</mosaic_0001>

<bundles_post_ra>
// kernel: tpu_custom_call.1
= control target key start
LH: loop header
LB: loop body
LE: loop exit
PB: predicated region body
PF: predicated region fallthrough
CT: control target
= control target key end

     0   :  { %10 = vsyncpa [#allocation3], 0  ;;  %s327_s0 = inlined_call_operand.vmem [shape: bf16[16,4], index: 0, kind: input, shape index: {}]   ;;  %s328_s1 = inlined_call_operand.vmem [shape: bf16[4,32], index: 1, kind: input, shape index: {}]   ;;  %s329_s2 = inlined_call_operand.vmem [shape: f32[1,32], index: 2, kind: input, shape index: {}]   ;;  %s330_s3 = inlined_call_operand.hbm [shape: bf16[32,128], index: 3, kind: input, shape index: {}]   ;;  %s331_s4 = inlined_call_operand.vmem [shape: f32[1,128], index: 4, kind: input, shape index: {}]   ;;  %s332_s5 = inlined_call_operand.hbm [shape: f32[16,128], index: 5, kind: output, shape index: {}]  }
   0x1   :  { %11 = vsyncpa [#allocation4], 0  ;;  %s271_s18 = smov [#allocation2]  }
   0x2   :  { %s23_s19 = sshll.u32 %s271_s18, 4  ;;  %s24_s19 = int_to_ptr.vmem [resolvable:$true] %s23_s19 }
   0x3   :  { %s235_s20 = scalar_lea.vmem %s24_s19, 256  ;;  %p240_p1 = scmp.lt.s32.totalorder %s24_s19, %s24_s19 }
   0x4   :  { %p236_p0 = scmp.ne.s32.totalorder %s24_s19, %s235_s20  ;;  %p241_p2 = scmp.lt.s32.totalorder %s235_s20, %s235_s20 }
   0x6   :  { %p242_p3 = por %p241_p2, %p240_p1 }
   0x8   :  { %p243_p4 = pnand %p242_p3, %p236_p0 }
   0xa   :  { %246 = shalt.err (!%p243_p4)
}
   0xb   :  { %s272_s21 = smov 64   ;;  %s273_s22 = smov 4  }
   0xc   :  { %29 = dma.hbm_to_vmem [thread:$0]  %s330_s3, 256, %s24_s19, [#allocation3], %s272_s21, %s272_s21, %s273_s22  }
   0xd   :  { %267 = dma.done.wait [#allocation3], 256  }
   0xe   :  { %268 = vsyncadd [#allocation3], 4294967040  ;;  %v274_v0 = vmov 0.0   ;;  %vm275_vm0 = vmmov 0   ;;  %vm55_vm1 = vcmask 1041408   ;;  %v224_v3 = vld [vmem:[%s327_s0] sm:$0xff]  }
   0xf   :  { %202 = vmatprep.subr.bf16.mxu0 %v274_v0  ;;  %204 = vmatprep.mubr.msk.bf16.mxu0 %vm275_vm0, %v274_v0  ;;  %v38_v1 = vld [vmem:[%s328_s1] sm:$0x3]  ;;  %vm51_vm2 = vcmask 31744   ;;  %v225_v4 = vld [vmem:[#allocation2 + $0x8] sm:$0xff]   ;;  %vm126_vm3 = vcmask 261120   ;;  %s276_s30 = smov [#allocation5]  }
  0x10   :  { %208 = vmatprep.subr.bf16.mxu1 %v274_v0  ;;  %212 = vmatprep.mubr.msk.bf16.mxu1 %vm275_vm0, %v274_v0  ;;  %v57_v2 = vsel %vm55_vm1, %v38_v1, 0  ;;  %v226_v5 = vld [vmem:[#allocation2] sm:$0xff]   ;;  %s178_s6 = sshll.u32 %s276_s30, 4  ;;  %s179_s6 = int_to_ptr.vmem [resolvable:$true] %s178_s6 }
  0x11   :  { %203 = vmatpush3.bf16.msra.mxu0 %v57_v2  ;;  %209 = vmatpush3.bf16.msra.mxu1 %v225_v4  ;;  %v190_v6 = vld [vmem:[%s329_s2] ss:$0 sm:$0xff]  ;;  %s247_s2 = scalar_lea.vmem %s179_s6, 256  ;;  %p252_p6 = scmp.lt.s32.totalorder %s179_s6, %s179_s6 }
  0x12   :  { %210 = vmatprep.subr.bf16.mxu1 %v274_v0  ;;  %v193_v16 = vld [vmem:[%s331_s4] ss:$0 sm:$0xff]  ;;  %p248_p5 = scmp.ne.s32.totalorder %s179_s6, %s247_s2  ;;  %p253_p7 = scmp.lt.s32.totalorder %s247_s2, %s247_s2 }
  0x14   :  { %205 = vmatmul.mubr.msk.bf16.vlgmr.msra.gmra.mxu0 %vm51_vm2, %v224_v3  ;;  %p254_p8 = por %p253_p7, %p252_p6 }
  0x15   :  { %211 = vmatpush3.bf16.msra.mxu1 %v226_v5 }
  0x16   :  { %p255_p9 = pnand %p254_p8, %p248_p5 }
  0xd4   :  { %v93_v7 = vpop.f32.mrf.mxu0 }
  0xd5   :  { %v94_v9 = vadd.f32 %v190_v6, %v93_v7 }
  0xd6   :  { %v206_v8 = vpop.f32.mrf.mxu0 }
  0xd7   :  { %v100_v13 = vmax.f32 %v94_v9, 0.0 }
  0xd8   :  { %v96_v10 = vpop.f32.mrf.mxu0 }
  0xd9   :  { %v97_v11 = vadd.f32 %v190_v6, %v96_v10 }
  0xda   :  { %v207_v12 = vpop.f32.mrf.mxu0 }
  0xdb   :  { %v101_v14 = vmax.f32 %v97_v11, 0.0 }
  0xdd   :  { %v102_v15 = vpack.c.bf16 %v101_v14, %v100_v13 }
  0xdf   :  { %213 = vmatmul.mubr.msk.bf16.vlgmr.msra.gmra.mxu1 %vm126_vm3, %v102_v15 }
 0x19f   :  { %v164_v17 = vpop.f32.mrf.mxu1 }
 0x1a0   :  { %v165_v18 = vadd.f32 %v193_v16, %v164_v17 }
 0x1a1   :  { %v214_v19 = vpop.f32.mrf.mxu1 }
 0x1a2   :  { %171 = vst [vmem:[#allocation5] sm:$0xff] %v165_v18 }
 0x1a3   :  { %v167_v20 = vpop.f32.mrf.mxu1 }
 0x1a4   :  { %v168_v21 = vadd.f32 %v193_v16, %v167_v20 }
 0x1a5   :  { %v215_v22 = vpop.f32.mrf.mxu1 }
 0x1a6   :  { %172 = vst [vmem:[#allocation5 + $0x8] sm:$0xff] %v168_v21 }
 0x1a7   :  { %258 = shalt.err (!%p255_p9)
}
 0x1a8   :  { %s277_s7 = smov 128   ;;  %s278_s4 = smov 8  }
 0x1a9   :  { %184 = dma.vmem_to_hbm [thread:$0]  %s179_s6, 256, %s332_s5, [#allocation4], %s277_s7, %s277_s7, %s278_s4  }
 0x1aa   :  { %269 = dma.done.wait [#allocation4], 256  }
 0x1ab   :  { %270 = vsyncadd [#allocation4], 4294967040 }
 0x1ac   :  { %188 = vsyncpa [#allocation3], 1 }
 0x1ad   :  { %189 = vsyncpa [#allocation4], 1 }

</bundles_post_ra>
